<compile_context>
chip_gen: v7x
topology: tpu7x:2x2x1
jax: 0.10.0
libtpu: 0.0.40
codegen_flags: <defaults>
</compile_context>

<pallas_src>
import math

import jax
import jax.numpy as jnp
from jax.experimental import pallas as pl
from jax.experimental.pallas import tpu as pltpu


def _native_sublanes(dtype):
    return {4: 8, 2: 16, 1: 32}.get(jnp.dtype(dtype).itemsize, 8)


def _fold_factor(M, K, sub):
    """Smallest r dividing K such that (M * r) % sub == 0 (fills sublanes)."""
    if M % sub == 0:
        return 1
    need = sub // math.gcd(M, sub)
    return need if K % need == 0 else 1


def _choose_tiles(M, K, itemsize, sub):
    """Pick (bm, bk) row/lane tiles: lane-dense, VMEM-capped, enough grid steps."""
    TILE_BUDGET = 6 * 1024 * 1024   # bytes per tile; x4 (in+out double-buffered) ~24 MiB
    LANE_CAP = 8192                 # lanes per tile
    MIN_STEPS = 8                   # pipelining / v7x dual-TC target for non-tiny inputs
    SMALL_BYTES = 2 * 1024 * 1024

    # Lane (last-dim) tile candidates: multiples of 128, descending.
    if K % 128 == 0:
        bk_cands = sorted(
            [t for t in range(128, min(K, LANE_CAP) + 1, 128) if K % t == 0],
            reverse=True,
        ) or [K]
    elif K <= LANE_CAP:
        bk_cands = [K]          # full extent (always layout-legal)
    else:
        bk_cands = [LANE_CAP]   # last K block is partial -> masked edge stores only there

    # Row (sublane) tile candidates: multiples of native sublane count, descending.
    if M % sub == 0:
        bm_cands = sorted(
            [t for t in range(sub, M + 1, sub) if M % t == 0], reverse=True
        )
    else:
        bm_cands = [M]          # full extent fallback (fold already tried)

    bk = bk_cands[0]
    bm = next((t for t in bm_cands if t * bk * itemsize <= TILE_BUDGET), bm_cands[-1])
    while bm * bk * itemsize > TILE_BUDGET and len(bk_cands) > 1:
        bk_cands = bk_cands[1:]
        bk = bk_cands[0]
        bm = next((t for t in bm_cands if t * bk * itemsize <= TILE_BUDGET), bm_cands[-1])

    # For non-tiny arrays, make sure there are enough grid steps so the
    # pipeline overlaps and megacore parts shard the work.
    if M * K * itemsize >= SMALL_BYTES:
        bi = bm_cands.index(bm)
        ki = bk_cands.index(bk)
        while (pl.cdiv(M, bm) * pl.cdiv(K, bk) < MIN_STEPS) and (
            bi + 1 < len(bm_cands) or ki + 1 < len(bk_cands)
        ):
            if bi + 1 < len(bm_cands):
                bi += 1
                bm = bm_cands[bi]
            else:
                ki += 1
                bk = bk_cands[ki]
    return bm, bk


def _make_kernel(bm):
    def kernel(x_ref, mean_ref, inv_std_ref, o_ref):
        # mean/inv_std may be resident full-(M,1) refs (slice our row tile) or
        # per-block (bm,1) refs (read whole) - distinguish by static shape.
        if mean_ref.shape[0] != bm:
            r0 = pl.multiple_of(pl.program_id(0) * bm, bm)
            mean = mean_ref[pl.ds(r0, bm), :]
            inv_std = inv_std_ref[pl.ds(r0, bm), :]
        else:
            mean = mean_ref[...]
            inv_std = inv_std_ref[...]
        x = x_ref[...].astype(jnp.float32)
        o_ref[...] = ((x - mean) * inv_std).astype(o_ref.dtype)

    return kernel


def normalize_pallas(img, mean, std):
    """img: (N, C, H, W); mean, std: per-channel (C,). Returns (img - mean) / std."""
    n, c, h, w = img.shape
    dtype = img.dtype
    itemsize = jnp.dtype(dtype).itemsize
    sub = _native_sublanes(dtype)

    M, K = n * c, h * w
    fold = _fold_factor(M, K, sub)            # fold spatial rows into sublanes if needed
    M2, K2 = M * fold, K // fold

    x2d = img.reshape(M2, K2)

    # Per-row parameters (row = (batch, channel) x fold), kept in float32.
    mean_rows = jnp.repeat(jnp.tile(jnp.asarray(mean, jnp.float32).reshape(-1), n), fold)
    inv_std_rows = jnp.repeat(
        jnp.tile(1.0 / jnp.asarray(std, jnp.float32).reshape(-1), n), fold
    )
    mean_rows = mean_rows.reshape(M2, 1)
    inv_std_rows = inv_std_rows.reshape(M2, 1)

    bm, bk = _choose_tiles(M2, K2, itemsize, sub)
    grid = (pl.cdiv(M2, bm), pl.cdiv(K2, bk))

    # Keep the params resident in VMEM (fetched once) unless M2 is unusually
    # large (lane padding to 128 would waste VMEM); then fall back to per-block.
    if M2 <= 4096:
        param_spec = pl.BlockSpec((M2, 1), lambda i, j: (0, 0))
    else:
        param_spec = pl.BlockSpec((bm, 1), lambda i, j: (i, 0))

    out2d = pl.pallas_call(
        _make_kernel(bm),
        out_shape=jax.ShapeDtypeStruct((M2, K2), dtype),
        grid_spec=pltpu.PrefetchScalarGridSpec(
            num_scalar_prefetch=0,
            grid=grid,
            in_specs=[
                pl.BlockSpec((bm, bk), lambda i, j: (i, j)),  # image tile
                param_spec,                                   # per-row mean
                param_spec,                                   # per-row 1/std
            ],
            out_specs=pl.BlockSpec((bm, bk), lambda i, j: (i, j)),
        ),
        compiler_params=pltpu.CompilerParams(
            dimension_semantics=("parallel", "parallel"),
            vmem_limit_bytes=32 * 1024 * 1024,
        ),
    )(x2d, mean_rows, inv_std_rows)
    return out2d.reshape(n, c, h, w)


class NormalizationPallas:
    """JAX/Pallas equivalent of the PyTorch Normalization module."""

    def __init__(self, mean, std):
        self.mean = jnp.asarray(mean, jnp.float32).reshape(-1)  # (C,)
        self.std = jnp.asarray(std, jnp.float32).reshape(-1)    # (C,)

    def __call__(self, img):
        return normalize_pallas(img, self.mean, self.std)


if __name__ == "__main__":
    key = jax.random.PRNGKey(0)
    k_img, k_mean, k_std = jax.random.split(key, 3)

    N, C, H, W = 2, 4, 16, 16  # NCHW; M = 8 rows, K = 256 lanes per row
    img = jax.random.normal(k_img, (N, C, H, W), jnp.float32)
    mean = jax.random.normal(k_mean, (C,), jnp.float32) * 0.5
    std = jax.random.uniform(k_std, (C,), jnp.float32, minval=0.5, maxval=1.5)

    module = NormalizationPallas(mean, std)
    out = jax.block_until_ready(module(img))

    # Correctness check vs. pure-JAX reference (matches PyTorch broadcasting).
    ref = (img - mean.reshape(1, C, 1, 1)) / std.reshape(1, C, 1, 1)
    assert out.shape == img.shape
    assert jnp.allclose(out, ref, rtol=1e-5, atol=1e-6), float(
        jnp.abs(out - ref).max()
    )

    print("KERNEL_OK")
</pallas_src>

<mosaic_0001>
module attributes {stable_mosaic.version = 11 : i64} {
  func.func @kernel(%arg0: i32, %arg1: i32, %arg2: memref<8x256xf32, #tpu.memory_space<vmem>>, %arg3: memref<8x1xf32, #tpu.memory_space<vmem>>, %arg4: memref<8x1xf32, #tpu.memory_space<vmem>>, %arg5: memref<8x256xf32, #tpu.memory_space<vmem>>) attributes {dimension_semantics = [#tpu.dimension_semantics<parallel>, #tpu.dimension_semantics<parallel>], iteration_bounds = array<i64: 1, 1>, scalar_prefetch = 0 : i64, scratch_operands = 0 : i64, tpu.core_type = #tpu.core_type<tc>, window_params = [{transform_indices = @transform_0, window_bounds = array<i64: 8, 256>}, {pipeline_mode = #tpu.pipeline_mode<synchronous>, transform_indices = @transform_1, window_bounds = array<i64: 8, 1>}, {pipeline_mode = #tpu.pipeline_mode<synchronous>, transform_indices = @transform_2, window_bounds = array<i64: 8, 1>}, {transform_indices = @transform_3, window_bounds = array<i64: 8, 256>}]} {
    %c0 = arith.constant 0 : index
    %c0_0 = arith.constant 0 : index
    %0 = vector.load %arg3[%c0, %c0_0] : memref<8x1xf32, #tpu.memory_space<vmem>>, vector<8x1xf32>
    %c0_1 = arith.constant 0 : index
    %c0_2 = arith.constant 0 : index
    %1 = vector.load %arg4[%c0_1, %c0_2] : memref<8x1xf32, #tpu.memory_space<vmem>>, vector<8x1xf32>
    %c0_3 = arith.constant 0 : index
    %c0_4 = arith.constant 0 : index
    %2 = vector.load %arg2[%c0_3, %c0_4] : memref<8x256xf32, #tpu.memory_space<vmem>>, vector<8x256xf32>
    %3 = vector.broadcast %0 : vector<8x1xf32> to vector<8x256xf32>
    %4 = arith.subf %2, %3 : vector<8x256xf32>
    %5 = vector.broadcast %1 : vector<8x1xf32> to vector<8x256xf32>
    %6 = arith.mulf %4, %5 : vector<8x256xf32>
    %c0_5 = arith.constant 0 : index
    %c0_6 = arith.constant 0 : index
    %7 = vector.load %arg5[%c0_5, %c0_6] : memref<8x256xf32, #tpu.memory_space<vmem>>, vector<8x256xf32>
    tpu.vector_store %arg5[%c0_5, %c0_6], %6 {strides = array<i32>} : memref<8x256xf32, #tpu.memory_space<vmem>>, vector<8x256xf32>,
    return
  }
  func.func @transform_0(%arg0: i32, %arg1: i32) -> (i32, i32) {
    %c0_i32 = arith.constant 0 : i32
    return %arg0, %arg1 : i32, i32
  }
  func.func @transform_1(%arg0: i32, %arg1: i32) -> (i32, i32) {
    %c0_i32 = arith.constant 0 : i32
    %c0_i32_0 = arith.constant 0 : i32
    %c0_i32_1 = arith.constant 0 : i32
    return %c0_i32, %c0_i32_0 : i32, i32
  }
  func.func @transform_2(%arg0: i32, %arg1: i32) -> (i32, i32) {
    %c0_i32 = arith.constant 0 : i32
    %c0_i32_0 = arith.constant 0 : i32
    %c0_i32_1 = arith.constant 0 : i32
    return %c0_i32, %c0_i32_0 : i32, i32
  }
  func.func @transform_3(%arg0: i32, %arg1: i32) -> (i32, i32) {
    %c0_i32 = arith.constant 0 : i32
    return %arg0, %arg1 : i32, i32
  }
}

</mosaic_0001>

<bundles_post_ra>
// kernel: tpu_custom_call.1
= control target key start
LH: loop header
LB: loop body
LE: loop exit
PB: predicated region body
PF: predicated region fallthrough
CT: control target
= control target key end

     0   :  { %v76_v1 = vmov 0   ;;  %s122_s0 = inlined_call_operand.vmem [shape: f32[8,256], index: 0, kind: input, shape index: {}]   ;;  %s123_s1 = inlined_call_operand.vmem [shape: f32[8,1], index: 1, kind: input, shape index: {}]   ;;  %s124_s2 = inlined_call_operand.vmem [shape: f32[8,1], index: 2, kind: input, shape index: {}]   ;;  %s125_s3 = inlined_call_operand.hbm [shape: f32[8,256], index: 3, kind: output, shape index: {}]  }
   0x1   :  { %v15_v0 = vld [vmem:[%s123_s1] sm:$0xff]  ;;  %51 = vset.pattern.permute.xlu0 %v76_v1 }
   0x2   :  { %8 = vsyncpa [#allocation3], 0  ;;  %21 = vperm.xlu0 %51, %v15_v0   ;;  %v16_v2 = vld [vmem:[%s124_s2] sm:$0xff]  ;;  %v18_v4 = vld [vmem:[%s122_s0 + $0x8] sm:$0xff]  ;;  %s77_s20 = smov [#allocation2]  }
   0x3   :  { %v17_v3 = vld [vmem:[%s122_s0] sm:$0xff]  ;;  %s41_s1 = sshll.u32 %s77_s20, 4  ;;  %s42_s1 = int_to_ptr.vmem [resolvable:$true] %s41_s1 }
   0x4   :  { %s52_s2 = scalar_lea.vmem %s42_s1, 256  ;;  %p57_p1 = scmp.lt.s32.totalorder %s42_s1, %s42_s1 }
   0x5   :  { %p53_p0 = scmp.ne.s32.totalorder %s42_s1, %s52_s2  ;;  %p58_p2 = scmp.lt.s32.totalorder %s52_s2, %s52_s2 }
   0x6   :  { %28 = vperm.xlu0 %51, %v16_v2  }
   0x7   :  { %p59_p3 = por %p58_p2, %p57_p1 }
   0x9   :  { %p60_p4 = pnand %p59_p3, %p53_p0 }
  0x81   :  { %v22_v5 = vpop.permute.xlu0 %21 }
  0x82   :  { %v24_v6 = vsub.f32 %v17_v3, %v22_v5  ;;  %v25_v7 = vsub.f32 %v18_v4, %v22_v5 }
  0x85   :  { %v29_v8 = vpop.permute.xlu0 %28 }
  0x86   :  { %v31_v9 = vmul.f32 %v29_v8, %v24_v6  ;;  %v32_v10 = vmul.f32 %v29_v8, %v25_v7 }
  0x88   :  { %33 = vst [vmem:[#allocation2] sm:$0xff] %v31_v9  ;;  %34 = vst [vmem:[#allocation2 + $0x8] sm:$0xff] %v32_v10 }
  0x89   :  { %63 = shalt.err (!%p60_p4)
}
  0x8a   :  { %s64_s22 = scalar_lea.hbm %s125_s3, 256 }
  0x8b   :  { %p65_p5 = scmp.ne.s32.totalorder %s125_s3, %s64_s22  ;;  %p68_p6 = scmp.lt.u32.totalorder %s64_s22, %s125_s3 }
  0x8d   :  { %p70_p7 = pnand %p68_p6, %p65_p5 }
  0x8f   :  { %73 = shalt.err (!%p70_p7)
}
  0x90   :  { %44 = dma.vmem_to_hbm [thread:$0]  %s42_s1, 256, %s125_s3, [#allocation3]  }
  0x91   :  { %74 = dma.done.wait [#allocation3], 256  }
  0x92   :  { %75 = vsyncadd [#allocation3], 4294967040 }
  0x93   :  { %48 = vsyncpa [#allocation3], 1 }

</bundles_post_ra>
